<compile_context>
chip_gen: v7x
topology: tpu7x:2x2x1
jax: 0.10.0
libtpu: 0.0.40
codegen_flags: <defaults>
</compile_context>

<pallas_src>
import jax
import jax.numpy as jnp
import numpy as np
from jax.experimental import pallas as pl
from jax.experimental.pallas import tpu as pltpu

# cfg.TRANS_HEAD.MLP_HEAD_DIM (synthetic, lane-friendly choice)
HIDDEN_DIM = 128


def _round_up(x, m):
    return (x + m - 1) // m * m


def _mlp2_kernel(x_ref, w1_ref, b1_ref, w2_ref, b2_ref, out_ref, acc_ref):
    """Fused 2-layer MLP with K-tiled fc1 accumulation.

    Grid: (batch_tiles, k_tiles); K is the last ("arbitrary") axis.
      fc1:  acc += x_tile @ w1_tile      (bf16 MXU, f32 accumulate)
      on last K step: h = relu(acc + b1); out = relu(h @ w2 + b2)
    """
    k = pl.program_id(1)
    nk = pl.num_programs(1)

    @pl.when(k == 0)
    def _init():
        acc_ref[...] = jnp.zeros_like(acc_ref)

    acc_ref[...] += jnp.dot(
        x_ref[...], w1_ref[...], preferred_element_type=jnp.float32
    )

    @pl.when(k == nk - 1)
    def _finalize():
        h = jnp.maximum(acc_ref[...] + b1_ref[...], 0.0)
        o = jnp.dot(
            h.astype(w2_ref.dtype), w2_ref[...],
            preferred_element_type=jnp.float32,
        )
        o = jnp.maximum(o + b2_ref[...], 0.0)
        out_ref[...] = o.astype(out_ref.dtype)


def bbox_2mlp_head_forward(x, w1, b1, w2, b2, *, tm=256, tk=512,
                           out_dtype=jnp.float32):
    """JAX wrapper.

    x : (B, C, H, W) or (B, dim_in)
    w1: (dim_in, hidden)   b1: (hidden,) or (1, hidden)
    w2: (hidden, hidden)   b2: (hidden,) or (1, hidden)
    Returns (B, hidden) in `out_dtype`.

    tm: batch tile (use 128 on v5e, 256 on v6e/v7x).
    tk: dim_in (K) tile, multiple of 128.
    """
    batch = x.shape[0]
    x2d = x.reshape(batch, -1)                   # == torch x.view(batch, -1)
    dim_in = x2d.shape[1]
    hidden = w1.shape[1]

    # ---- derive padded / tiled sizes --------------------------------------
    hidden_p = _round_up(hidden, 128)            # lane-dense output width
    tm_eff = min(tm, _round_up(batch, 16))       # bf16-friendly sublane tile
    b_p = _round_up(batch, tm_eff)
    tk_eff = min(tk, _round_up(dim_in, 128))
    k_p = _round_up(dim_in, tk_eff)

    # ---- cast to bf16 (MXU-native, halves HBM traffic) and zero-pad -------
    x_b = jnp.pad(x2d.astype(jnp.bfloat16),
                  ((0, b_p - batch), (0, k_p - dim_in)))
    w1_b = jnp.pad(w1.astype(jnp.bfloat16),
                   ((0, k_p - dim_in), (0, hidden_p - hidden)))
    w2_b = jnp.pad(w2.astype(jnp.bfloat16),
                   ((0, hidden_p - hidden), (0, hidden_p - hidden)))
    b1_2d = jnp.pad(b1.reshape(1, hidden).astype(jnp.float32),
                    ((0, 0), (0, hidden_p - hidden)))
    b2_2d = jnp.pad(b2.reshape(1, hidden).astype(jnp.float32),
                    ((0, 0), (0, hidden_p - hidden)))

    grid = (b_p // tm_eff, k_p // tk_eff)

    # ---- advisory cost estimate for the XLA scheduler ----------------------
    flops = int(2 * batch * dim_in * hidden + 2 * batch * hidden * hidden)
    bytes_accessed = int(
        x_b.size * 2 + w1_b.size * 2 + w2_b.size * 2
        + (b1_2d.size + b2_2d.size) * 4
        + b_p * hidden_p * jnp.dtype(out_dtype).itemsize
    )
    cost = pl.CostEstimate(flops=flops, transcendentals=0,
                           bytes_accessed=bytes_accessed)

    out_p = pl.pallas_call(
        _mlp2_kernel,
        out_shape=jax.ShapeDtypeStruct((b_p, hidden_p), out_dtype),
        grid_spec=pltpu.PrefetchScalarGridSpec(
            num_scalar_prefetch=0,
            grid=grid,
            in_specs=[
                # X: depends on both batch tile i and K tile k
                pl.BlockSpec((tm_eff, tk_eff), lambda i, k: (i, k)),
                # W1: depends only on k -> resident across batch tiles
                pl.BlockSpec((tk_eff, hidden_p), lambda i, k: (k, 0)),
                # b1, W2, b2: constant block index -> fully VMEM-resident
                pl.BlockSpec((1, hidden_p), lambda i, k: (0, 0)),
                pl.BlockSpec((hidden_p, hidden_p), lambda i, k: (0, 0)),
                pl.BlockSpec((1, hidden_p), lambda i, k: (0, 0)),
            ],
            out_specs=pl.BlockSpec((tm_eff, hidden_p), lambda i, k: (i, 0)),
            scratch_shapes=[pltpu.VMEM((tm_eff, hidden_p), jnp.float32)],
        ),
        compiler_params=pltpu.CompilerParams(
            dimension_semantics=("parallel", "arbitrary")),
        cost_estimate=cost,
    )(x_b, w1_b, b1_2d, w2_b, b2_2d)

    return out_p[:batch, :hidden]


def _xavier_fill(key, fan_in, fan_out):
    # Detectron XavierFill == caffe2 Xavier: uniform(-s, s), s = sqrt(3/fan_in)
    scale = np.sqrt(3.0 / fan_in)
    return jax.random.uniform(key, (fan_in, fan_out), jnp.float32,
                              minval=-scale, maxval=scale)


def _reference(x2d, w1, b1, w2, b2):
    # Same bf16-input / f32-accumulate math as the kernel.
    h = jnp.dot(x2d.astype(jnp.bfloat16), w1.astype(jnp.bfloat16),
                preferred_element_type=jnp.float32) + b1.reshape(1, -1)
    h = jnp.maximum(h, 0.0)
    o = jnp.dot(h.astype(jnp.bfloat16), w2.astype(jnp.bfloat16),
                preferred_element_type=jnp.float32) + b2.reshape(1, -1)
    return jnp.maximum(o, 0.0)


if __name__ == "__main__":
    # Small shapes consistent with the module: NCHW ROI-pooled feature map.
    B, C, H, W = 8, 4, 16, 16
    dim_in = C * H * W                            # flattened feature dim

    key = jax.random.PRNGKey(0)
    kx, k1, k2 = jax.random.split(key, 3)

    x = jax.random.normal(kx, (B, C, H, W), jnp.float32)

    # Parameters (deterministic synthetic init mirroring _init_weights):
    # fc1.weight Xavier, fc1.bias 0; fc2.weight Xavier, fc2.bias 0.
    # Stored as (in, out) == PyTorch weight transposed.
    w1 = _xavier_fill(k1, dim_in, HIDDEN_DIM)
    b1 = jnp.zeros((HIDDEN_DIM,), jnp.float32)
    w2 = _xavier_fill(k2, HIDDEN_DIM, HIDDEN_DIM)
    b2 = jnp.zeros((HIDDEN_DIM,), jnp.float32)

    out = bbox_2mlp_head_forward(x, w1, b1, w2, b2)
    out = jax.block_until_ready(out)

    # Reference check (matches the kernel's bf16-input / f32-accumulate path;
    # the bf16 cast itself introduces ~1e-2 error vs a pure-f32 PyTorch run).
    ref = _reference(x.reshape(B, -1), w1, b1, w2, b2)
    np.testing.assert_allclose(np.asarray(out), np.asarray(ref),
                               rtol=1e-3, atol=1e-3)

    print("KERNEL_OK")
</pallas_src>

<mosaic_0001>
module attributes {stable_mosaic.version = 11 : i64} {
  func.func @_mlp2_kernel(%arg0: i32, %arg1: i32, %arg2: memref<16x512xbf16, #tpu.memory_space<vmem>>, %arg3: memref<512x128xbf16, #tpu.memory_space<vmem>>, %arg4: memref<1x128xf32, #tpu.memory_space<vmem>>, %arg5: memref<128x128xbf16, #tpu.memory_space<vmem>>, %arg6: memref<1x128xf32, #tpu.memory_space<vmem>>, %arg7: memref<16x128xf32, #tpu.memory_space<vmem>>, %arg8: memref<16x128xf32, #tpu.memory_space<vmem>>) attributes {dimension_semantics = [#tpu.dimension_semantics<parallel>, #tpu.dimension_semantics<arbitrary>], iteration_bounds = array<i64: 1, 2>, scalar_prefetch = 0 : i64, scratch_operands = 1 : i64, tpu.core_type = #tpu.core_type<tc>, window_params = [{transform_indices = @transform_0, window_bounds = array<i64: 16, 512>}, {transform_indices = @transform_1, window_bounds = array<i64: 512, 128>}, {pipeline_mode = #tpu.pipeline_mode<synchronous>, transform_indices = @transform_2, window_bounds = array<i64: 1, 128>}, {pipeline_mode = #tpu.pipeline_mode<synchronous>, transform_indices = @transform_3, window_bounds = array<i64: 128, 128>}, {pipeline_mode = #tpu.pipeline_mode<synchronous>, transform_indices = @transform_4, window_bounds = array<i64: 1, 128>}, {transform_indices = @transform_5, window_bounds = array<i64: 16, 128>}]} {
    %c0_i32 = arith.constant 0 : i32
    %0 = arith.cmpi eq, %arg1, %c0_i32 : i32
    %1 = arith.extui %0 : i1 to i32
    %c0_i32_0 = arith.constant 0 : i32
    %2 = arith.cmpi ne, %1, %c0_i32_0 : i32
    scf.if %2 {
      %cst_9 = arith.constant 0.000000e+00 : f32
      %12 = vector.broadcast %cst_9 : f32 to vector<16x128xf32>
      %c0_10 = arith.constant 0 : index
      %c0_11 = arith.constant 0 : index
      %13 = vector.load %arg8[%c0_10, %c0_11] : memref<16x128xf32, #tpu.memory_space<vmem>>, vector<16x128xf32>
      tpu.vector_store %arg8[%c0_10, %c0_11], %12 {strides = array<i32>} : memref<16x128xf32, #tpu.memory_space<vmem>>, vector<16x128xf32>,
    } else {
    }
    %c0 = arith.constant 0 : index
    %c0_1 = arith.constant 0 : index
    %3 = vector.load %arg8[%c0, %c0_1] : memref<16x128xf32, #tpu.memory_space<vmem>>, vector<16x128xf32>
    %c0_2 = arith.constant 0 : index
    %c0_3 = arith.constant 0 : index
    %4 = vector.load %arg2[%c0_2, %c0_3] : memref<16x512xbf16, #tpu.memory_space<vmem>>, vector<16x512xbf16>
    %c0_4 = arith.constant 0 : index
    %c0_5 = arith.constant 0 : index
    %5 = vector.load %arg3[%c0_4, %c0_5] : memref<512x128xbf16, #tpu.memory_space<vmem>>, vector<512x128xbf16>
    %cst = arith.constant dense<0.000000e+00> : vector<16x128xf32>
    %6 = tpu.matmul %4, %5, %cst {dimension_numbers = #tpu.dot_dimension_numbers<[1], [0], [0], [1], [0, 0, 1, 1], [], []>} : vector<16x512xbf16>, vector<512x128xbf16>, vector<16x128xf32> -> vector<16x128xf32>
    %7 = arith.addf %3, %6 : vector<16x128xf32>
    %c0_6 = arith.constant 0 : index
    %c0_7 = arith.constant 0 : index
    %8 = vector.load %arg8[%c0_6, %c0_7] : memref<16x128xf32, #tpu.memory_space<vmem>>, vector<16x128xf32>
    tpu.vector_store %arg8[%c0_6, %c0_7], %7 {strides = array<i32>} : memref<16x128xf32, #tpu.memory_space<vmem>>, vector<16x128xf32>,
    %c1_i32 = arith.constant 1 : i32
    %9 = arith.cmpi eq, %arg1, %c1_i32 : i32
    %10 = arith.extui %9 : i1 to i32
    %c0_i32_8 = arith.constant 0 : i32
    %11 = arith.cmpi ne, %10, %c0_i32_8 : i32
    scf.if %11 {
      %c0_9 = arith.constant 0 : index
      %c0_10 = arith.constant 0 : index
      %12 = vector.load %arg8[%c0_9, %c0_10] : memref<16x128xf32, #tpu.memory_space<vmem>>, vector<16x128xf32>
      %c0_11 = arith.constant 0 : index
      %c0_12 = arith.constant 0 : index
      %13 = vector.load %arg4[%c0_11, %c0_12] : memref<1x128xf32, #tpu.memory_space<vmem>>, vector<1x128xf32>
      %14 = vector.broadcast %13 : vector<1x128xf32> to vector<16x128xf32>
      %15 = arith.addf %12, %14 : vector<16x128xf32>
      %cst_13 = arith.constant 0.000000e+00 : f32
      %16 = vector.broadcast %cst_13 : f32 to vector<16x128xf32>
      %17 = arith.maximumf %15, %16 : vector<16x128xf32>
      %18 = arith.truncf %17 : vector<16x128xf32> to vector<16x128xbf16>
      %c0_14 = arith.constant 0 : index
      %c0_15 = arith.constant 0 : index
      %19 = vector.load %arg5[%c0_14, %c0_15] : memref<128x128xbf16, #tpu.memory_space<vmem>>, vector<128x128xbf16>
      %cst_16 = arith.constant dense<0.000000e+00> : vector<16x128xf32>
      %20 = tpu.matmul %18, %19, %cst_16 {dimension_numbers = #tpu.dot_dimension_numbers<[1], [0], [0], [1], [0, 0, 1, 1], [], []>} : vector<16x128xbf16>, vector<128x128xbf16>, vector<16x128xf32> -> vector<16x128xf32>
      %c0_17 = arith.constant 0 : index
      %c0_18 = arith.constant 0 : index
      %21 = vector.load %arg6[%c0_17, %c0_18] : memref<1x128xf32, #tpu.memory_space<vmem>>, vector<1x128xf32>
      %22 = vector.broadcast %21 : vector<1x128xf32> to vector<16x128xf32>
      %23 = arith.addf %20, %22 : vector<16x128xf32>
      %cst_19 = arith.constant 0.000000e+00 : f32
      %24 = vector.broadcast %cst_19 : f32 to vector<16x128xf32>
      %25 = arith.maximumf %23, %24 : vector<16x128xf32>
      %c0_20 = arith.constant 0 : index
      %c0_21 = arith.constant 0 : index
      %26 = vector.load %arg7[%c0_20, %c0_21] : memref<16x128xf32, #tpu.memory_space<vmem>>, vector<16x128xf32>
      tpu.vector_store %arg7[%c0_20, %c0_21], %25 {strides = array<i32>} : memref<16x128xf32, #tpu.memory_space<vmem>>, vector<16x128xf32>,
    } else {
    }
    return
  }
  func.func @transform_0(%arg0: i32, %arg1: i32) -> (i32, i32) {
    %c0_i32 = arith.constant 0 : i32
    return %arg0, %arg1 : i32, i32
  }
  func.func @transform_1(%arg0: i32, %arg1: i32) -> (i32, i32) {
    %c0_i32 = arith.constant 0 : i32
    %c0_i32_0 = arith.constant 0 : i32
    return %arg1, %c0_i32 : i32, i32
  }
  func.func @transform_2(%arg0: i32, %arg1: i32) -> (i32, i32) {
    %c0_i32 = arith.constant 0 : i32
    %c0_i32_0 = arith.constant 0 : i32
    %c0_i32_1 = arith.constant 0 : i32
    return %c0_i32, %c0_i32_0 : i32, i32
  }
  func.func @transform_3(%arg0: i32, %arg1: i32) -> (i32, i32) {
    %c0_i32 = arith.constant 0 : i32
    %c0_i32_0 = arith.constant 0 : i32
    %c0_i32_1 = arith.constant 0 : i32
    return %c0_i32, %c0_i32_0 : i32, i32
  }
  func.func @transform_4(%arg0: i32, %arg1: i32) -> (i32, i32) {
    %c0_i32 = arith.constant 0 : i32
    %c0_i32_0 = arith.constant 0 : i32
    %c0_i32_1 = arith.constant 0 : i32
    return %c0_i32, %c0_i32_0 : i32, i32
  }
  func.func @transform_5(%arg0: i32, %arg1: i32) -> (i32, i32) {
    %c0_i32 = arith.constant 0 : i32
    %c0_i32_0 = arith.constant 0 : i32
    return %arg0, %c0_i32 : i32, i32
  }
}

</mosaic_0001>

<bundles_post_ra>
// kernel: tpu_custom_call.1
= control target key start
LH: loop header
LB: loop body
LE: loop exit
PB: predicated region body
PF: predicated region fallthrough
CT: control target
= control target key end

     0   :  { %s1702_s0 = inlined_call_operand.hbm [shape: bf16[16,1024], index: 0, kind: input, shape index: {}]   ;;  %s1703_s1 = inlined_call_operand.hbm [shape: bf16[1024,128], index: 1, kind: input, shape index: {}]   ;;  %s1704_s2 = inlined_call_operand.vmem [shape: f32[1,128], index: 2, kind: input, shape index: {}]   ;;  %s1705_s3 = inlined_call_operand.hbm [shape: bf16[128,128], index: 3, kind: input, shape index: {}]   ;;  %s1706_s4 = inlined_call_operand.vmem [shape: f32[1,128], index: 4, kind: input, shape index: {}]   ;;  %s1707_s5 = inlined_call_operand.hbm [shape: f32[16,128], index: 5, kind: output, shape index: {}]  }
   0x1   :  { %1715 = sst [smem:[#allocation15_spill]] %s1702_s0 }
   0x2   :  { %1716 = sst [smem:[#allocation16_spill]] %s1705_s3 }
   0x3   :  { %10 = vsyncpa [#allocation4], 0 }
   0x4   :  { %12 = vsyncpa [#allocation4 + $0x1], 0 }
   0x5   :  { %13 = vsyncpa [#allocation7], 0 }
   0x6   :  { %15 = vsyncpa [#allocation7 + $0x1], 0 }
   0x7   :  { %16 = vsyncpa [#allocation5], 0  ;;  %s1425_s18 = smov 0   ;;  %s1427_s19 = smov 0  }
   0x8   :  { %s1429_s20 = smov 0   ;;  %s1431_s21 = smov 0  }
   0x9   :  { %s1433_s22 = smov 0   ;;  %s1435_s23 = smov 0  }
   0xa LB: > { %s1454_s24 = sadd.s32 4294967295, %s1379_s23   ;;  %s43_s25 = sadd.s32 1, %s1367_s20  ;;  %s1379_s23 = sphi %s1435_s23, %s22_s23   ;;  %s1375_s22 = sphi %s1433_s22, %s1737_s22   ;;  %s1371_s21 = sphi %s1431_s21, %s1736_s21   ;;  %s1367_s20 = sphi %s1429_s20, %s1735_s20   ;;  %s1363_s19 = sphi %s1427_s19, %s1734_s19   ;;  %s1359_s18 = sphi %s1425_s18, %s1733_s18  }
   0xb   : > { %p50_p0 = scmp.ne.s32.totalorder %s1367_s20, %s1363_s19  ;;  %p51_p1 = scmp.eq.s32.totalorder %s1379_s23, 0 }
   0xc   : > { %p56_p2 = scmp.ne.s32.totalorder %s1363_s19, %s1359_s18  ;;  %p1708_p3 = scmp.eq.s32.totalorder %s1454_s24, 0 }
   0xd   : > { %p52_p4 = por %p51_p1, %p50_p0  ;;  %p929_p5 = scmp.ge.s32.totalorder %s1379_s23, 1 }
   0xe   : > { %p1465_p6 = por %p1708_p3, %p56_p2  ;;  %p182_p7 = scmp.lt.s32.totalorder %s1379_s23, 3 }
   0xf   : > { %s1381_s28 = smov [#allocation8]   ;;  %p1093_p10 = scmp.lt.s32.totalorder %s1379_s23, 2 }
  0x10   : > { %s1717_s26 = scalar_select %p1465_p6, 1, 0 }
  0x11   : > { %p1470_p8 = pnand %p929_p5, %p182_p7  ;;  %s197_s29 = sshll.u32 %s1381_s28, 4  ;;  %s198_s29 = int_to_ptr.vmem [resolvable:$true] %s197_s29 }
  0x12   : > { %p1483_p12 = pnand %p1093_p10, %p52_p4  ;;  %s31_s7 = sadd.s32 1, %s1375_s22 }
  0x13   : > { %s1718_s27 = scalar_select %p1470_p8, 1, 0 }
  0x14   : > { %p1081_p9 = pneg %p1470_p8  ;;  %s1721_s3 = sld [smem:[#allocation16_spill]] }
  0x15   : > { %s1720_s6 = scalar_select %p1483_p12, 1, 0 }
  0x16   : > { %p1479_p11 = pnand %p1081_p9, %p1708_p3 }
  0x18   : > { %p1205_p0 = pneg %p1479_p11 }
  0x1a   : > { %s1203_s10 = scalar_lea.hbm %s1721_s3, 1024 }
  0x1b   : > { %p1204_p13 = scmp.ne.s32.totalorder %s1721_s3, %s1203_s10  ;;  %p1210_p4 = scmp.lt.u32.totalorder %s1203_s10, %s1721_s3 }
  0x1d   : > { %p1206_p1 = pnand %p1205_p0, %p1204_p13 }
  0x1f   : > { %p1207_p2 = pneg %p1206_p1 }
  0x21   : > { %p1212_p5 = pnand %p1210_p4, %p1207_p2 }
  0x23   : > { %1215 = shalt.err (!%p1212_p5)
}
  0x24   : > { %s1216_s15 = scalar_lea.vmem %s198_s29, 1024  ;;  %p1224_p3 = scmp.lt.s32.totalorder %s198_s29, %s198_s29 }
  0x25   : > { %p1217_p7 = scmp.ne.s32.totalorder %s198_s29, %s1216_s15  ;;  %p1225_p6 = scmp.lt.s32.totalorder %s1216_s15, %s1216_s15 }
  0x27   : > { %p1219_p9 = pnand %p1217_p7, %p1205_p0  ;;  %p1226_p8 = por %p1225_p6, %p1224_p3 }
  0x29   : > { %p1220_p10 = pneg %p1219_p9 }
  0x2b   : > { %p1227_p12 = pnand %p1226_p8, %p1220_p10 }
  0x2d   : > { %1230 = shalt.err (!%p1227_p12)
}
  0x2e   : > { %s1712_s16 = smov 64   ;;  %s1713_s17 = smov 4  }
  0x2f   : > { %1084 = dma.hbm_to_vmem [thread:$0]  (!%p1479_p11), %s1721_s3, 1024, %s198_s29, [#allocation7], %s1712_s16, %s1712_s16, %s1713_s17  }
  0x30   : > { %p32_p3 = scmp.ge.s32.totalorder %s31_s7, 2  ;;  %s1508_s8 = sand.u32 1, %s1367_s20  }
  0x31   : > { %s994_s9 = sshll.u32 %s1375_s22, 8  ;;  %s932_s10 = sshll.u32 %s1508_s8, 5 }
  0x32   : > { %s1739_s7 = smov (%p32_p3, %s31_s7), 0  ;;  %s1723_s0 = sld [smem:[#allocation15_spill]] }
  0x33   : > { %1722 = sst [smem:[#allocation14_spill]] %s1739_s7  ;;  %s39_s30 = ssub.s32 %s1375_s22, %s1739_s7 }
  0x34   : > { %p41_p6 = scmp.eq.s32.totalorder %s39_s30, 0  ;;  %s218_s29 = scalar_lea.vmem [#allocation3], %s932_s10 }
  0x35   : > { %s228_s14 = sshll.u32 %s218_s29, 4  ;;  %s215_s28 = scalar_lea.sflag [#allocation4], %s1508_s8  ;;  %s1526_s14 = int_to_ptr.vmem [resolvable:$true] %s228_s14 }
  0x36   : > { %s1524_s15 = scalar_select %p41_p6, %s1367_s20, %s43_s25  }
  0x37   : > { %p1724_p11 = scmp.ne.s32.totalorder %s1720_s6, 0 }
  0x38   : > { %s1519_s13 = scalar_lea.hbm %s1723_s0, %s994_s9  ;;  %s1236_s10 = scalar_lea.hbm %s1723_s0, 1024 }
  0x39   : > { %s1231_s16 = scalar_lea.hbm %s1519_s13, 512  ;;  %p1233_p12 = pneg %p1724_p11 }
  0x3a   : > { %p1232_p8 = scmp.ne.s32.totalorder %s1519_s13, %s1231_s16  ;;  %p1237_p1 = scmp.lt.u32.totalorder %s1519_s13, %s1723_s0 }
  0x3b   : > { %p1238_p2 = scmp.lt.u32.totalorder %s1236_s10, %s1231_s16  ;;  %p1240_p5 = scmp.lt.u32.totalorder %s1231_s16, %s1519_s13 }
  0x3c   : > { %p1234_p13 = pnand %p1233_p12, %p1232_p8 }
  0x3d   : > { %p1239_p4 = por %p1238_p2, %p1237_p1 }
  0x3e   : > { %p1235_p0 = pneg %p1234_p13 }
  0x3f   : > { %p1241_p7 = por %p1240_p5, %p1239_p4 }
  0x41   : > { %p1242_p9 = pnand %p1241_p7, %p1235_p0 }
  0x43   : > { %1245 = shalt.err (!%p1242_p9)
}
  0x44   : > { %s1246_s25 = scalar_lea.vmem %s1526_s14, 512  ;;  %s1384_s29 = smov [#allocation3]  }
  0x45   : > { %p1247_p10 = scmp.ne.s32.totalorder %s1526_s14, %s1246_s25  ;;  %s1251_s9 = sshll.u32 %s1384_s29, 4  ;;  %s1252_s9 = int_to_ptr.vmem [resolvable:$false] %s1251_s9 }
  0x46   : > { %s1253_s30 = scalar_lea.vmem %s1252_s9, 1024  ;;  %p1254_p8 = scmp.lt.s32.totalorder %s1526_s14, %s1252_s9 }
  0x47   : > { %p1249_p3 = pnand %p1247_p10, %p1233_p12  ;;  %p1255_p13 = scmp.lt.s32.totalorder %s1253_s30, %s1246_s25 }
  0x49   : > { %p1250_p6 = pneg %p1249_p3  ;;  %p1256_p1 = por %p1255_p13, %p1254_p8 }
  0x4b   : > { %p1257_p2 = pnand %p1256_p1, %p1250_p6 }
  0x4d   : > { %1260 = shalt.err (!%p1257_p2)
}
  0x4e   : > { %s1385_s16 = smov 512   ;;  %s1386_s10 = smov 256  }
  0x4f   : > { %s1387_s11 = smov 16   ;;  %s935_s12 = sshll.u32 %s1508_s8, 8 }
  0x50   : > { %1088 = dma.hbm_to_vmem [thread:$0]  (!%p1724_p11), %s1519_s13, 512, %s1526_s14, %s215_s28, %s1385_s16, %s1386_s10, %s1387_s11  }
  0x51   : > { %s995_s29 = sshll.u32 %s1375_s22, 12  ;;  %s242_s17 = scalar_lea.vmem [#allocation6], %s935_s12 }
  0x52   : > { %s1562_s30 = scalar_lea.hbm %s1703_s1, %s995_s29  ;;  %s249_s18 = sshll.u32 %s242_s17, 4  ;;  %s1564_s18 = int_to_ptr.vmem [resolvable:$true] %s249_s18 }
  0x53   : > { %s1725_s0 = sand.u32 1, %s1379_s23   ;;  %s1261_s7 = scalar_lea.hbm %s1562_s30, 4096 }
  0x54   : > { %s1568_s3 = scalar_lea.sflag [#allocation7], %s1725_s0  ;;  %p1262_p0 = scmp.ne.s32.totalorder %s1562_s30, %s1261_s7 }
  0x55   : > { %s1266_s14 = scalar_lea.hbm %s1703_s1, 8192  ;;  %p1267_p7 = scmp.lt.u32.totalorder %s1562_s30, %s1703_s1 }
  0x56   : > { %p1264_p4 = pnand %p1262_p0, %p1233_p12  ;;  %p1268_p9 = scmp.lt.u32.totalorder %s1266_s14, %s1261_s7 }
  0x57   : > { %p1270_p3 = scmp.lt.u32.totalorder %s1261_s7, %s1562_s30 }
  0x58   : > { %p1265_p5 = pneg %p1264_p4  ;;  %p1269_p10 = por %p1268_p9, %p1267_p7 }
  0x5a   : > { %p1271_p6 = por %p1270_p3, %p1269_p10 }
  0x5c   : > { %p1272_p8 = pnand %p1271_p6, %p1265_p5 }
  0x5e   : > { %1275 = shalt.err (!%p1272_p8)
}
  0x5f   : > { %s1276_s0 = scalar_lea.vmem %s1564_s18, 4096  ;;  %s1388_s17 = smov [#allocation6]  }
  0x60   : > { %p1277_p13 = scmp.ne.s32.totalorder %s1564_s18, %s1276_s0  ;;  %s1281_s10 = sshll.u32 %s1388_s17, 4  ;;  %s1282_s10 = int_to_ptr.vmem [resolvable:$false] %s1281_s10 }
  0x61   : > { %s1283_s11 = scalar_lea.vmem %s1282_s10, 8192  ;;  %p1284_p0 = scmp.lt.s32.totalorder %s1564_s18, %s1282_s10 }
  0x62   : > { %p1279_p1 = pnand %p1277_p13, %p1233_p12  ;;  %p1285_p4 = scmp.lt.s32.totalorder %s1283_s11, %s1276_s0 }
  0x64   : > { %p1280_p2 = pneg %p1279_p1  ;;  %p1286_p7 = por %p1285_p4, %p1284_p0 }
  0x66   : > { %p1287_p9 = pnand %p1286_p7, %p1280_p2 }
  0x68   : > { %1290 = shalt.err (!%p1287_p9)
}
  0x69   : > { %s1726_s7 = smov 4   ;;  %s1727_s12 = smov 64  }
  0x6a   : > { %1091 = dma.hbm_to_vmem [thread:$0]  (!%p1724_p11), %s1562_s30, 4096, %s1564_s18, %s1568_s3, %s1727_s12, %s1727_s12, %s1726_s7  }
  0x6b   : > { %p1728_p12 = scmp.ne.s32.totalorder %s1718_s27, 0 }
  0x6c   : > { %s263_s29 = sand.u32 (!%p1728_p12), 1, %s1363_s19   ;;  %p1729_p5 = scmp.ne.s32.totalorder (!%p1728_p12), %s1717_s26, 0 }
  0x6d   : > { %261 = sbr.rel (%p1728_p12) target bundleno = 647 (0x287), region = 40  ;;  %s939_s25 = sshll.u32 (!%p1728_p12), %s263_s29, 5 }
  0x6e   : > { %s264_s9 = scalar_lea.sflag (!%p1728_p12), [#allocation4], %s263_s29  ;;  %s1600_s8 = scalar_lea.vmem (!%p1728_p12), [#allocation3], %s939_s25 }
  0x74   : > { %1342 = dma.done.wait (%p1729_p5), %s264_s9, 512  }
  0x75   : > { %1344 = vsyncadd (%p1729_p5), %s264_s9, 4294966784  ;;  %s272_s6 = sand.u32 1, %s1454_s24   ;;  %s940_s13 = sshll.u32 %s263_s29, 8 }
  0x76   : > { %s273_s3 = scalar_lea.sflag [#allocation7], %s272_s6  ;;  %s1607_s18 = scalar_lea.vmem [#allocation6], %s940_s13 }
  0x77   : > { %1346 = dma.done.wait (%p1729_p5), %s273_s3, 4096  }
  0x78   : > { %1348 = vsyncadd (%p1729_p5), %s273_s3, 4294963200  ;;  %p1730_p11 = scmp.eq.s32.totalorder %s1454_s24, 0 }
  0x7a   : > { %1350 = dma.done.wait (%p1730_p11), [#allocation7], 1024   ;;  %p1731_p10 = pmov %p1730_p11 }
  0x7b   : > { %p942_p3 = scmp.ne.s32.totalorder %s1371_s21, 0 }
  0x7c   : > { %1352 = vsyncadd (%p1731_p10), [#allocation7], 4294966272  ;;  %v1389_v0 = vmov (!%p942_p3), 0.0  }
  0x7d   : > { %315 = sbr.rel (%p942_p3) target bundleno = 132 (0x84), region = 56  ;;  %316 = vst [vmem:[#allocation2] sm:$0xff] (!%p942_p3), %v1389_v0  ;;  %317 = vst [vmem:[#allocation2 + $0x8] sm:$0xff] (!%p942_p3), %v1389_v0 }
  0x84 PF: > { %v1157_v1 = vld [vmem:[%s1607_s18 + $0x40] sm:$0xff]   ;;  %v1161_v5 = vld [vmem:[%s1607_s18 + $0x48] sm:$0xff]   ;;  %v1165_v9 = vld [vmem:[%s1607_s18 + $0x50] sm:$0xff]   ;;  %p979_p6 = scmp.ne.s32.totalorder %s1371_s21, 1 }
  0x85   : > { %v1158_v2 = vld [vmem:[%s1607_s18 + $0xc0] sm:$0xff]   ;;  %996 = vmatprep.subr.bf16.mxu0 %v1157_v1  ;;  %v1162_v6 = vld [vmem:[%s1607_s18 + $0xc8] sm:$0xff]   ;;  %v1166_v10 = vld [vmem:[%s1607_s18 + $0xd0] sm:$0xff]   ;;  %v1390_v56 = vmov (!%p979_p6), 0.0   ;;  %vm1391_vm0 = vmmov (!%p979_p6), 0  }
  0x86   : > { %v1159_v3 = vld [vmem:[%s1607_s18] sm:$0xff]   ;;  %1018 = vmatprep.subr.bf16.mxu1 %v1158_v2  ;;  %v1163_v7 = vld [vmem:[%s1607_s18 + $0x8] sm:$0xff]   ;;  %v1167_v11 = vld [vmem:[%s1607_s18 + $0x10] sm:$0xff]  }
  0x87   : > { %v1160_v4 = vld [vmem:[%s1607_s18 + $0x80] sm:$0xff]   ;;  %997 = vmatpush3.bf16.msra.mxu0 %v1159_v3  ;;  %v1164_v8 = vld [vmem:[%s1607_s18 + $0x88] sm:$0xff]   ;;  %v1168_v12 = vld [vmem:[%s1607_s18 + $0x90] sm:$0xff]  }
  0x88   : > { %1019 = vmatpush3.bf16.msra.mxu1 %v1160_v4  ;;  %998 = vmatprep.subr.bf16.mxu0 %v1161_v5  ;;  %v1169_v13 = vld [vmem:[%s1607_s18 + $0x58] sm:$0xff]   ;;  %v1173_v17 = vld [vmem:[%s1607_s18 + $0x60] sm:$0xff]   ;;  %v1177_v21 = vld [vmem:[%s1607_s18 + $0x68] sm:$0xff]  }
  0x89   : > { %1020 = vmatprep.subr.bf16.mxu1 %v1162_v6  ;;  %v1170_v14 = vld [vmem:[%s1607_s18 + $0xd8] sm:$0xff]   ;;  %v1174_v18 = vld [vmem:[%s1607_s18 + $0xe0] sm:$0xff]   ;;  %v1178_v22 = vld [vmem:[%s1607_s18 + $0xe8] sm:$0xff]  }
  0x8a   : > { %v1171_v15 = vld [vmem:[%s1607_s18 + $0x18] sm:$0xff]   ;;  %v1175_v19 = vld [vmem:[%s1607_s18 + $0x20] sm:$0xff]   ;;  %v1179_v23 = vld [vmem:[%s1607_s18 + $0x28] sm:$0xff]  }
  0x8b   : > { %999 = vmatpush3.bf16.msra.mxu0 %v1163_v7  ;;  %v1172_v16 = vld [vmem:[%s1607_s18 + $0x98] sm:$0xff]   ;;  %v1176_v20 = vld [vmem:[%s1607_s18 + $0xa0] sm:$0xff]   ;;  %v1180_v24 = vld [vmem:[%s1607_s18 + $0xa8] sm:$0xff]  }
  0x8c   : > { %1021 = vmatpush3.bf16.msra.mxu1 %v1164_v8  ;;  %1000 = vmatprep.subr.bf16.mxu0 %v1165_v9  ;;  %v1181_v25 = vld [vmem:[%s1607_s18 + $0x70] sm:$0xff]   ;;  %v1185_v29 = vld [vmem:[%s1607_s18 + $0x78] sm:$0xff]   ;;  %v1195_v55 = vld [vmem:[#allocation8] sm:$0xff] (!%p979_p6)  }
  0x8d   : > { %1022 = vmatprep.subr.bf16.mxu1 %v1166_v10  ;;  %v1182_v26 = vld [vmem:[%s1607_s18 + $0xf0] sm:$0xff]   ;;  %v1186_v30 = vld [vmem:[%s1607_s18 + $0xf8] sm:$0xff]   ;;  %v1196_v57 = vld [vmem:[#allocation8 + $0x8] sm:$0xff] (!%p979_p6)  }
  0x8e   : > { %v1183_v27 = vld [vmem:[%s1607_s18 + $0x30] sm:$0xff]   ;;  %v1187_v31 = vld [vmem:[%s1607_s18 + $0x38] sm:$0xff]   ;;  %v1199_v60 = vld [vmem:[#allocation8 + $0x20] sm:$0xff] (!%p979_p6)  }
  0x8f   : > { %1001 = vmatpush3.bf16.msra.mxu0 %v1167_v11  ;;  %v1184_v28 = vld [vmem:[%s1607_s18 + $0xb0] sm:$0xff]   ;;  %v1188_v32 = vld [vmem:[%s1607_s18 + $0xb8] sm:$0xff]   ;;  %v1200_v61 = vld [vmem:[#allocation8 + $0x28] sm:$0xff] (!%p979_p6)  }
  0x90   : > { %1023 = vmatpush3.bf16.msra.mxu1 %v1168_v12  ;;  %1002 = vmatprep.subr.bf16.mxu0 %v1169_v13  ;;  %v1189_v33 = vld [vmem:[%s1600_s8] ss:$16 sps:$4 sm:$0xff]   ;;  %v1191_v34 = vld [vmem:[%s1600_s8 + $0x4] ss:$16 sps:$4 sm:$0xff]   ;;  %v1192_v35 = vld [vmem:[%s1600_s8 + $0x8] ss:$16 sps:$4 sm:$0xff]  }
  0x91   : > { %1024 = vmatprep.subr.bf16.mxu1 %v1170_v14  ;;  %v1194_v36 = vld [vmem:[%s1600_s8 + $0xc] ss:$16 sps:$4 sm:$0xff]   ;;  %632 = vmatprep.mubr.bf16.mxu0 %v1191_v34  ;;  %v318_v46 = vld [vmem:[#allocation2] sm:$0xff] }
  0x92   : > { %673 = vmatprep.mubr.bf16.mxu1 %v1194_v36  ;;  %v319_v51 = vld [vmem:[#allocation2 + $0x8] sm:$0xff]  ;;  %v1197_v58 = vld [vmem:[#allocation8 + $0x10] sm:$0xff] (!%p979_p6)  }
  0x93   : > { %1003 = vmatpush3.bf16.msra.mxu0 %v1171_v15  ;;  %v1198_v59 = vld [vmem:[#allocation8 + $0x18] sm:$0xff] (!%p979_p6)   ;;  %v980_v0 = vld [vmem:[%s1704_s2] ss:$0 sm:$0xff] (!%p979_p6) }
  0x94   : > { %1025 = vmatpush3.bf16.msra.mxu1 %v1172_v16  ;;  %1004 = vmatprep.subr.bf16.mxu0 %v1173_v17  ;;  %v1201_v3 = vld [vmem:[#allocation8 + $0x30] sm:$0xff] (!%p979_p6)   ;;  %v1202_v6 = vld [vmem:[#allocation8 + $0x38] sm:$0xff] (!%p979_p6)  }
  0x95   : > { %1026 = vmatprep.subr.bf16.mxu1 %v1174_v18  ;;  %v981_v8 = vld [vmem:[%s1706_s4] ss:$0 sm:$0xff] (!%p979_p6) }
  0x97   : > { %1005 = vmatpush3.bf16.msra.mxu0 %v1175_v19 }
  0x98   : > { %1027 = vmatpush3.bf16.msra.mxu1 %v1176_v20  ;;  %1006 = vmatprep.subr.bf16.mxu0 %v1177_v21 }
  0x99   : > { %1028 = vmatprep.subr.bf16.mxu1 %v1178_v22 }
  0x9b   : > { %1007 = vmatpush3.bf16.msra.mxu0 %v1179_v23 }
  0x9c   : > { %1029 = vmatpush3.bf16.msra.mxu1 %v1180_v24  ;;  %1008 = vmatprep.subr.bf16.mxu0 %v1181_v25 }
  0x9d   : > { %1030 = vmatprep.subr.bf16.mxu1 %v1182_v26 }
  0x9f   : > { %1009 = vmatpush3.bf16.msra.mxu0 %v1183_v27 }
  0xa0   : > { %1031 = vmatpush3.bf16.msra.mxu1 %v1184_v28  ;;  %1010 = vmatprep.subr.bf16.mxu0 %v1185_v29 }
  0xa1   : > { %1032 = vmatprep.subr.bf16.mxu1 %v1186_v30 }
  0xa3   : > { %1011 = vmatpush3.bf16.msra.mxu0 %v1187_v31 }
  0xa4   : > { %1033 = vmatpush3.bf16.msra.mxu1 %v1188_v32  ;;  %1049 = vmatprep.subr.bf16.mxu0 (!%p979_p6), %v1390_v56 }
  0xa6   : > { %633 = vmatmul.mubr.bf16.vlgmr.msra.gmra.mrb[0].mxu0 %v1189_v33 }
  0xa7   : > { %674 = vmatmul.mubr.bf16.vlgmr.msra.gmra.mrb[0].mxu1 %v1192_v35  ;;  %1050 = vmatpush3.bf16.msra.mxu0 (!%p979_p6), %v1195_v55 }
  0xa8   : > { %1065 = vmatprep.mubr.msk.bf16.mxu0 (!%p979_p6), %vm1391_vm0, %v1390_v56  ;;  %1051 = vmatprep.subr.bf16.mxu0 (!%p979_p6), %v1390_v56 }
  0xab   : > { %1052 = vmatpush3.bf16.msra.mxu0 (!%p979_p6), %v1196_v57 }
  0xac   : > { %1053 = vmatprep.subr.bf16.mxu0 (!%p979_p6), %v1390_v56 }
  0xaf   : > { %1054 = vmatpush3.bf16.msra.mxu0 (!%p979_p6), %v1197_v58 }
  0xb0   : > { %1055 = vmatprep.subr.bf16.mxu0 (!%p979_p6), %v1390_v56 }
  0xb3   : > { %1056 = vmatpush3.bf16.msra.mxu0 (!%p979_p6), %v1198_v59 }
  0xb4   : > { %1057 = vmatprep.subr.bf16.mxu0 (!%p979_p6), %v1390_v56 }
  0xb7   : > { %1058 = vmatpush3.bf16.msra.mxu0 (!%p979_p6), %v1199_v60 }
  0xb8   : > { %1059 = vmatprep.subr.bf16.mxu0 (!%p979_p6), %v1390_v56 }
  0xbb   : > { %1060 = vmatpush3.bf16.msra.mxu0 (!%p979_p6), %v1200_v61 }
  0xbc   : > { %1061 = vmatprep.subr.bf16.mxu0 (!%p979_p6), %v1390_v56 }
  0xbf   : > { %1062 = vmatpush3.bf16.msra.mxu0 (!%p979_p6), %v1201_v3 }
  0xc0   : > { %1063 = vmatprep.subr.bf16.mxu0 (!%p979_p6), %v1390_v56 }
  0xc3   : > { %1064 = vmatpush3.bf16.msra.mxu0 (!%p979_p6), %v1202_v6 }
 0x179   : > { %v1012_v37 = vpop.f32.mrb[0].mxu0 }
 0x17a   : > { %v1034_v38 = vpop.f32.mrb[0].mxu1  ;;  %v1013_v39 = vpop.f32.mrb[1].mxu0 }
 0x17b   : > { %v1014_v40 = vadd.f32 %v1013_v39, %v1012_v37  ;;  %v1035_v41 = vpop.f32.mrb[1].mxu1  ;;  %v1015_v42 = vpop.f32.mrb[2].mxu0 }
 0x17c   : > { %v1036_v43 = vadd.f32 %v1035_v41, %v1034_v38  ;;  %v1037_v44 = vpop.f32.mrb[2].mxu1  ;;  %v1016_v45 = vpop.f32.mrb[3].mxu0 }
 0x17d   : > { %v1017_v47 = vadd.f32 %v1016_v45, %v1015_v42  ;;  %v1038_v48 = vpop.f32.mrb[3].mxu1 }
 0x17e   : > { %v676_v49 = vadd.f32 %v1036_v43, %v1014_v40  ;;  %v1039_v50 = vadd.f32 %v1038_v48, %v1037_v44  ;;  %689 = sbr.rel (%p979_p6) target bundleno = 621 (0x26d), region = 60 }
 0x180   : > { %v682_v52 = vadd.f32 %v676_v49, %v318_v46  ;;  %v679_v53 = vadd.f32 %v1039_v50, %v1017_v47 }
 0x182   : > { %684 = vst [vmem:[#allocation2] sm:$0xff] %v682_v52  ;;  %v683_v54 = vadd.f32 %v679_v53, %v319_v51 }
 0x184   : > { %685 = vst [vmem:[#allocation2 + $0x8] sm:$0xff] %v683_v54 }
 0x189   : > { %v690_v62 = vld [vmem:[#allocation2] sm:$0xff] }
 0x18a   : > { %v699_v1 = vadd.f32 %v980_v0, %v690_v62 }
 0x18b   : > { %v691_v63 = vld [vmem:[#allocation2 + $0x8] sm:$0xff] }
 0x18c   : > { %v700_v2 = vadd.f32 %v980_v0, %v691_v63  ;;  %v701_v4 = vmax.f32 %v699_v1, 0.0 }
 0x18e   : > { %v702_v5 = vmax.f32 %v700_v2, 0.0 }
 0x190   : > { %v703_v7 = vpack.c.bf16 %v702_v5, %v701_v4 }
 0x192   : > { %1066 = vmatmul.mubr.bf16.vlgmr.msra.gmra.mrb[0].mxu0 %v703_v7 }
 0x265   : > { %v809_v9 = vpop.f32.mrb[0].mxu0 }
 0x266   : > { %v810_v10 = vadd.f32 %v981_v8, %v809_v9  ;;  %v1067_v11 = vpop.f32.mrb[1].mxu0 }
 0x267   : > { %v812_v12 = vpop.f32.mrb[2].mxu0 }
 0x268   : > { %v816_v13 = vmax.f32 %v810_v10, 0.0  ;;  %v813_v14 = vadd.f32 %v981_v8, %v812_v12  ;;  %v1068_v15 = vpop.f32.mrb[3].mxu0 }
 0x26a   : > { %818 = vst [vmem:[#allocation9] sm:$0xff] %v816_v13  ;;  %v817_v16 = vmax.f32 %v813_v14, 0.0 }
 0x26c   : > { %819 = vst [vmem:[#allocation9 + $0x8] sm:$0xff] %v817_v16 }
 0x26d PF: > { %p1095_p8 = scmp.eq.s32.totalorder %s1454_s24, 1  ;;  %s1392_s14 = smov [#allocation9]  }
 0x26e   : > { %s829_s28 = sshll.u32 %s1392_s14, 4  ;;  %s830_s28 = int_to_ptr.vmem [resolvable:$true] %s829_s28 }
 0x26f   : > { %s1291_s16 = scalar_lea.vmem %s830_s28, 256  ;;  %p1298_p0 = scmp.lt.s32.totalorder %s830_s28, %s830_s28 }
 0x270   : > { %p1292_p13 = scmp.ne.s32.totalorder %s830_s28, %s1291_s16  ;;  %p1299_p4 = scmp.lt.s32.totalorder %s1291_s16, %s1291_s16 }
 0x272   : > { %p1293_p1 = pnand %p1292_p13, %p1095_p8  ;;  %p1300_p7 = por %p1299_p4, %p1298_p0 }
 0x274   : > { %p1294_p2 = pneg %p1293_p1 }
 0x276   : > { %p1301_p9 = pnand %p1300_p7, %p1294_p2 }
 0x278   : > { %1304 = shalt.err (!%p1301_p9)
}
 0x279   : > { %s1305_s10 = scalar_lea.hbm %s1707_s5, 256 }
 0x27a   : > { %p1306_p12 = scmp.ne.s32.totalorder %s1707_s5, %s1305_s10  ;;  %p1311_p10 = scmp.lt.u32.totalorder %s1305_s10, %s1707_s5 }
 0x27c   : > { %p1307_p5 = pnand %p1306_p12, %p1095_p8 }
 0x27e   : > { %p1308_p11 = pneg %p1307_p5 }
 0x280   : > { %p1313_p3 = pnand %p1311_p10, %p1308_p11 }
 0x282   : > { %1316 = shalt.err (!%p1313_p3)
}
 0x283   : > { %s1393_s25 = smov 128   ;;  %s1394_s9 = smov 8  }
 0x284   : > { %1078 = dma.vmem_to_hbm [thread:$0]  (%p1095_p8), %s830_s28, 256, %s1707_s5, [#allocation5], %s1393_s25, %s1393_s25, %s1394_s9  }
 0x285   : > { %1354 = dma.done.wait (%p1095_p8), [#allocation5], 256  }
 0x286   : > { %1356 = vsyncadd (%p1095_p8), [#allocation5], 4294967040 }
 0x287 PF: > { %s22_s23 = sadd.s32 1, %s1379_s23   ;;  %s1732_s13 = sld [smem:[#allocation14_spill]] }
 0x288   : > { %p19_p6 = scmp.ge.s32.totalorder %s22_s23, 4   ;;  %s1733_s18 = smov %s1363_s19 }
 0x289   : > { %s1734_s19 = smov %s1367_s20  ;;  %s1735_s20 = smov %s1524_s15 }
 0x28a   : > { %s1736_s21 = smov %s1375_s22  ;;  %21 = sbr.rel (!%p19_p6) target bundleno = 10 (0xa), region = 103 }
 0x28d   : > { %s1737_s22 = smov %s1732_s13 }
 0x291   :  { %845 = vsyncpa [#allocation4], 1 }
 0x292   :  { %847 = vsyncpa [#allocation4 + $0x1], 1 }
 0x293   :  { %848 = vsyncpa [#allocation7], 1 }
 0x294   :  { %850 = vsyncpa [#allocation7 + $0x1], 1 }
 0x295   :  { %851 = vsyncpa [#allocation5], 1 }
 0x296   :  { %853 = vsyncpa [#allocation5 + $0x1], 1 }

</bundles_post_ra>
